<compile_context>
chip_gen: v5e
topology: v5e:2x2
jax: 0.10.0
libtpu: 0.0.40
codegen_flags: <defaults>
</compile_context>

<pallas_src>
import functools

import jax
import jax.numpy as jnp
from jax.experimental import pallas as pl
from jax.experimental.pallas import tpu as pltpu


NO_PAD = 128          # lane-dense output width
MAX_TILE_B = 8192     # rows per grid step for very large batches


def _round_up(x, m):
    return ((x + m - 1) // m) * m


def reward_approx_kernel(state_ref, action_ref,
                         w1t_ref, tbl_ref, w3at_ref, wot_ref, bias_ref,
                         out_ref, *, compute_dtype, h1):
    x = state_ref[...]                         # [TB, nS], compute_dtype
    act = action_ref[...]                      # [TB, 1], int32
    nA1 = tbl_ref.shape[0]                     # nA + 1 (last row holds b3)
    TB = act.shape[0]

    # one-hot(action) with a trailing ones column that always selects the b3 row
    lane_ids = jax.lax.broadcasted_iota(jnp.int32, (TB, nA1), 1)
    oh = ((lane_ids == act) | (lane_ids == (nA1 - 1))).astype(compute_dtype)

    b1 = bias_ref[0:1, :h1]                    # [1, h1]  f32
    bo = bias_ref[1:2, :]                      # [1, 128] f32

    # fc1 = relu(state @ W1.T + b1)                            -> [TB, h1]
    fc1 = jnp.dot(x, w1t_ref[...], preferred_element_type=jnp.float32) + b1
    fc1 = jnp.maximum(fc1, 0.0)

    # folded fc2 branch + b3:  one_hot(a) @ [T ; b3]           -> [TB, h3]
    act_c = jnp.dot(oh, tbl_ref[...], preferred_element_type=jnp.float32)

    # fc3 = relu(fc1 @ W3a.T + act_c)                          -> [TB, h3]
    fc3 = jnp.dot(fc1.astype(compute_dtype), w3at_ref[...],
                  preferred_element_type=jnp.float32)
    fc3 = jnp.maximum(fc3 + act_c, 0.0)

    # out = fc3 @ Wo.T(padded to 128 lanes) + bo               -> [TB, 128]
    out = jnp.dot(fc3.astype(compute_dtype), wot_ref[...],
                  preferred_element_type=jnp.float32) + bo
    out_ref[...] = out.astype(out_ref.dtype)


def reward_approximator(state, action, params, *, tile_b=None,
                        compute_dtype=jnp.bfloat16):
    """state: [B, nS], action: [B] int, params: PyTorch-layout weights."""
    B, nS = state.shape
    nA = params["w2"].shape[0]
    nO = params["wo"].shape[0]
    h1 = params["w1"].shape[0]          # 20
    h3 = params["w3"].shape[0]          # 10

    # ---- wrapper-side precompute (constant per call, done once) ----
    w1t = params["w1"].T.astype(compute_dtype)                 # [nS, h1]
    w3 = params["w3"]                                          # [h3, h1+nA]
    w3at = w3[:, :h1].T.astype(compute_dtype)                  # [h1, h3]
    w3bt = w3[:, h1:].T                                        # [nA, h3]
    # table row a = relu(W2[:, a] + b2) @ W3b.T  (exact fold of the fc2 branch);
    # a trailing b3 row is selected by the ones column of the one-hot.
    tbl = jax.nn.relu(params["w2"].T + params["b2"]) @ w3bt    # [nA, h3]
    tbl = jnp.concatenate([tbl, params["b3"]], axis=0).astype(compute_dtype)
    # lane-dense output weights / packed biases
    wot_pad = jnp.zeros((h3, NO_PAD), jnp.float32)
    wot_pad = wot_pad.at[:, :nO].set(params["wo"].T).astype(compute_dtype)
    biases = jnp.zeros((2, NO_PAD), jnp.float32)
    biases = biases.at[0, :h1].set(params["b1"][0])
    biases = biases.at[1, :nO].set(params["bo"][0])

    state_c = state if state.dtype == compute_dtype else state.astype(compute_dtype)
    action_2d = action.reshape(B, 1).astype(jnp.int32)

    # ---- batch tiling (grid-step count, not VMEM, is the constraint here) ----
    sub = 16 if compute_dtype == jnp.bfloat16 else 8   # sublane granularity
    if tile_b is None:
        if B <= MAX_TILE_B:
            # 2 equal blocks once the batch is big enough -> both v7x TCs busy;
            # otherwise a single block (no grid overhead at all).
            if B >= 2048 and B % (2 * sub) == 0:
                tile_b = B // 2
            else:
                tile_b = B
        else:
            n = pl.cdiv(B, MAX_TILE_B)
            if n % 2:
                n += 1                                  # even block count for v7x
            tile_b = _round_up(pl.cdiv(B, n), sub)
    else:
        if tile_b < B:
            tile_b = _round_up(tile_b, sub)
        tile_b = min(tile_b, B)
    n_blocks = pl.cdiv(B, tile_b)   # ragged last block handled by Pallas masking

    kernel = functools.partial(reward_approx_kernel,
                               compute_dtype=compute_dtype, h1=h1)
    const = lambda i: (0, 0)        # weights / table / biases stay VMEM-resident

    out = pl.pallas_call(
        kernel,
        out_shape=jax.ShapeDtypeStruct((B, NO_PAD), jnp.float32),
        grid=(n_blocks,),
        in_specs=[
            pl.BlockSpec((tile_b, nS), lambda i: (i, 0)),   # state
            pl.BlockSpec((tile_b, 1), lambda i: (i, 0)),    # action
            pl.BlockSpec((nS, h1), const),                  # W1.T
            pl.BlockSpec((nA + 1, h3), const),              # [T ; b3]
            pl.BlockSpec((h1, h3), const),                  # W3a.T
            pl.BlockSpec((h3, NO_PAD), const),              # Wo.T (lane-padded)
            pl.BlockSpec((2, NO_PAD), const),               # packed b1 / bo
        ],
        out_specs=pl.BlockSpec((tile_b, NO_PAD), lambda i: (i, 0)),
        compiler_params=pltpu.CompilerParams(
            dimension_semantics=("parallel",)),
    )(state_c, action_2d, w1t, tbl, w3at, wot_pad, biases)

    return out[:, :nO]


def init_params(key, nS, nA, nO):
    """Deterministic PyTorch-style uniform(-1/sqrt(fan_in), 1/sqrt(fan_in)) init."""
    def linear(key, out_f, in_f):
        kw, kb = jax.random.split(key)
        bound = 1.0 / jnp.sqrt(jnp.float32(in_f))
        w = jax.random.uniform(kw, (out_f, in_f), jnp.float32, -bound, bound)
        b = jax.random.uniform(kb, (1, out_f), jnp.float32, -bound, bound)
        return w, b

    k1, k2, k3, k4 = jax.random.split(key, 4)
    w1, b1 = linear(k1, 20, nS)
    w2, b2 = linear(k2, nA, nA)
    w3, b3 = linear(k3, 10, 20 + nA)
    wo, bo = linear(k4, nO, 10)
    return dict(w1=w1, b1=b1, w2=w2, b2=b2, w3=w3, b3=b3, wo=wo, bo=bo)


def reference_forward(state, action, p):
    """Pure-JAX reference mirroring the PyTorch forward."""
    nA = p["w2"].shape[0]
    oh = jax.nn.one_hot(action, nA, dtype=jnp.float32)
    fc1 = jax.nn.relu(state @ p["w1"].T + p["b1"])
    fc2 = jax.nn.relu(oh @ p["w2"].T + p["b2"])
    fc3 = jax.nn.relu(jnp.concatenate([fc1, fc2], axis=1) @ p["w3"].T + p["b3"])
    return fc3 @ p["wo"].T + p["bo"]


if __name__ == "__main__":
    # Small shapes consistent with the module: nS=(32,), nA=8, nO=4, batch=8
    B, nS, nA, nO = 8, 32, 8, 4

    key = jax.random.PRNGKey(0)
    k_state, k_action, k_params = jax.random.split(key, 3)

    state = jax.random.normal(k_state, (B, nS), jnp.float32)
    action = jax.random.randint(k_action, (B,), 0, nA, jnp.int32)
    params = init_params(k_params, nS, nA, nO)

    ref = reference_forward(state, action, params)

    # f32 compute path — exact vs reference, single block
    out_f32 = jax.block_until_ready(
        reward_approximator(state, action, params, compute_dtype=jnp.float32))
    assert out_f32.shape == (B, nO)
    assert jnp.allclose(out_f32, ref, atol=1e-5, rtol=1e-5), "f32 mismatch vs reference"

    # bf16 compute path (f32 accumulation) — default, looser tolerance
    out_bf16 = jax.block_until_ready(
        reward_approximator(state, action, params, compute_dtype=jnp.bfloat16))
    assert out_bf16.shape == (B, nO)
    assert jnp.allclose(out_bf16, ref, atol=5e-2, rtol=5e-2), "bf16 mismatch vs reference"

    # multi-block path with a ragged last block (no wrapper-side jnp.pad)
    B2 = 300
    k2s, k2a = jax.random.split(jax.random.PRNGKey(1))
    state2 = jax.random.normal(k2s, (B2, nS), jnp.float32)
    action2 = jax.random.randint(k2a, (B2,), 0, nA, jnp.int32)
    ref2 = reference_forward(state2, action2, params)
    out2 = jax.block_until_ready(
        reward_approximator(state2, action2, params, tile_b=128,
                            compute_dtype=jnp.float32))
    assert out2.shape == (B2, nO)
    assert jnp.allclose(out2, ref2, atol=1e-5, rtol=1e-5), "tiled path mismatch"

    print("KERNEL_OK")
</pallas_src>

<mosaic_0001>
module attributes {stable_mosaic.version = 11 : i64} {
  func.func @reward_approx_kernel(%arg0: i32, %arg1: memref<8x32xf32, #tpu.memory_space<vmem>>, %arg2: memref<8x1xi32, #tpu.memory_space<vmem>>, %arg3: memref<32x20xf32, #tpu.memory_space<vmem>>, %arg4: memref<9x10xf32, #tpu.memory_space<vmem>>, %arg5: memref<20x10xf32, #tpu.memory_space<vmem>>, %arg6: memref<10x128xf32, #tpu.memory_space<vmem>>, %arg7: memref<2x128xf32, #tpu.memory_space<vmem>>, %arg8: memref<8x128xf32, #tpu.memory_space<vmem>>) attributes {dimension_semantics = [#tpu.dimension_semantics<parallel>], iteration_bounds = array<i64: 1>, scalar_prefetch = 0 : i64, scratch_operands = 0 : i64, tpu.core_type = #tpu.core_type<tc>, window_params = [{transform_indices = @transform_0, window_bounds = array<i64: 8, 32>}, {transform_indices = @transform_1, window_bounds = array<i64: 8, 1>}, {pipeline_mode = #tpu.pipeline_mode<synchronous>, transform_indices = @transform_2, window_bounds = array<i64: 32, 20>}, {pipeline_mode = #tpu.pipeline_mode<synchronous>, transform_indices = @transform_3, window_bounds = array<i64: 9, 10>}, {pipeline_mode = #tpu.pipeline_mode<synchronous>, transform_indices = @transform_4, window_bounds = array<i64: 20, 10>}, {pipeline_mode = #tpu.pipeline_mode<synchronous>, transform_indices = @transform_5, window_bounds = array<i64: 10, 128>}, {pipeline_mode = #tpu.pipeline_mode<synchronous>, transform_indices = @transform_6, window_bounds = array<i64: 2, 128>}, {transform_indices = @transform_7, window_bounds = array<i64: 8, 128>}]} {
    %c0 = arith.constant 0 : index
    %c0_0 = arith.constant 0 : index
    %0 = vector.load %arg1[%c0, %c0_0] : memref<8x32xf32, #tpu.memory_space<vmem>>, vector<8x32xf32>
    %c0_1 = arith.constant 0 : index
    %c0_2 = arith.constant 0 : index
    %1 = vector.load %arg2[%c0_1, %c0_2] : memref<8x1xi32, #tpu.memory_space<vmem>>, vector<8x1xi32>
    %2 = tpu.iota {dimensions = array<i32: 1>} : vector<8x9xi32>
    %3 = vector.broadcast %1 : vector<8x1xi32> to vector<8x9xi32>
    %4 = arith.cmpi eq, %2, %3 : vector<8x9xi32>
    %c8_i32 = arith.constant 8 : i32
    %5 = vector.broadcast %c8_i32 : i32 to vector<8x9xi32>
    %6 = arith.cmpi eq, %2, %5 : vector<8x9xi32>
    %7 = arith.ori %4, %6 : vector<8x9xi1>
    %8 = arith.extui %7 : vector<8x9xi1> to vector<8x9xi32>
    %9 = arith.sitofp %8 : vector<8x9xi32> to vector<8x9xf32>
    %c0_3 = arith.constant 0 : index
    %c0_4 = arith.constant 0 : index
    %10 = vector.load %arg7[%c0_3, %c0_4] : memref<2x128xf32, #tpu.memory_space<vmem>>, vector<1x20xf32>
    %c1 = arith.constant 1 : index
    %c0_5 = arith.constant 0 : index
    %11 = vector.load %arg7[%c1, %c0_5] : memref<2x128xf32, #tpu.memory_space<vmem>>, vector<1x128xf32>
    %c0_6 = arith.constant 0 : index
    %c0_7 = arith.constant 0 : index
    %12 = vector.load %arg3[%c0_6, %c0_7] : memref<32x20xf32, #tpu.memory_space<vmem>>, vector<32x20xf32>
    %cst = arith.constant dense<0.000000e+00> : vector<8x20xf32>
    %13 = tpu.matmul %0, %12, %cst {dimension_numbers = #tpu.dot_dimension_numbers<[1], [0], [0], [1], [0, 0, 1, 1], [], []>} : vector<8x32xf32>, vector<32x20xf32>, vector<8x20xf32> -> vector<8x20xf32>
    %14 = vector.broadcast %10 : vector<1x20xf32> to vector<8x20xf32>
    %15 = arith.addf %13, %14 : vector<8x20xf32>
    %cst_8 = arith.constant 0.000000e+00 : f32
    %16 = vector.broadcast %cst_8 : f32 to vector<8x20xf32>
    %17 = arith.maximumf %15, %16 : vector<8x20xf32>
    %c0_9 = arith.constant 0 : index
    %c0_10 = arith.constant 0 : index
    %18 = vector.load %arg4[%c0_9, %c0_10] : memref<9x10xf32, #tpu.memory_space<vmem>>, vector<9x10xf32>
    %cst_11 = arith.constant dense<0.000000e+00> : vector<8x10xf32>
    %19 = tpu.matmul %9, %18, %cst_11 {dimension_numbers = #tpu.dot_dimension_numbers<[1], [0], [0], [1], [0, 0, 1, 1], [], []>} : vector<8x9xf32>, vector<9x10xf32>, vector<8x10xf32> -> vector<8x10xf32>
    %c0_12 = arith.constant 0 : index
    %c0_13 = arith.constant 0 : index
    %20 = vector.load %arg5[%c0_12, %c0_13] : memref<20x10xf32, #tpu.memory_space<vmem>>, vector<20x10xf32>
    %cst_14 = arith.constant dense<0.000000e+00> : vector<8x10xf32>
    %21 = tpu.matmul %17, %20, %cst_14 {dimension_numbers = #tpu.dot_dimension_numbers<[1], [0], [0], [1], [0, 0, 1, 1], [], []>} : vector<8x20xf32>, vector<20x10xf32>, vector<8x10xf32> -> vector<8x10xf32>
    %22 = arith.addf %21, %19 : vector<8x10xf32>
    %cst_15 = arith.constant 0.000000e+00 : f32
    %23 = vector.broadcast %cst_15 : f32 to vector<8x10xf32>
    %24 = arith.maximumf %22, %23 : vector<8x10xf32>
    %c0_16 = arith.constant 0 : index
    %c0_17 = arith.constant 0 : index
    %25 = vector.load %arg6[%c0_16, %c0_17] : memref<10x128xf32, #tpu.memory_space<vmem>>, vector<10x128xf32>
    %cst_18 = arith.constant dense<0.000000e+00> : vector<8x128xf32>
    %26 = tpu.matmul %24, %25, %cst_18 {dimension_numbers = #tpu.dot_dimension_numbers<[1], [0], [0], [1], [0, 0, 1, 1], [], []>} : vector<8x10xf32>, vector<10x128xf32>, vector<8x128xf32> -> vector<8x128xf32>
    %27 = vector.broadcast %11 : vector<1x128xf32> to vector<8x128xf32>
    %28 = arith.addf %26, %27 : vector<8x128xf32>
    %c0_19 = arith.constant 0 : index
    %c0_20 = arith.constant 0 : index
    %29 = vector.load %arg8[%c0_19, %c0_20] : memref<8x128xf32, #tpu.memory_space<vmem>>, vector<8x128xf32>
    tpu.vector_store %arg8[%c0_19, %c0_20], %28 {strides = array<i32>} : memref<8x128xf32, #tpu.memory_space<vmem>>, vector<8x128xf32>,
    return
  }
  func.func @transform_0(%arg0: i32) -> (i32, i32) {
    %c0_i32 = arith.constant 0 : i32
    %c0_i32_0 = arith.constant 0 : i32
    return %arg0, %c0_i32 : i32, i32
  }
  func.func @transform_1(%arg0: i32) -> (i32, i32) {
    %c0_i32 = arith.constant 0 : i32
    %c0_i32_0 = arith.constant 0 : i32
    return %arg0, %c0_i32 : i32, i32
  }
  func.func @transform_2(%arg0: i32) -> (i32, i32) {
    %c0_i32 = arith.constant 0 : i32
    %c0_i32_0 = arith.constant 0 : i32
    %c0_i32_1 = arith.constant 0 : i32
    return %c0_i32, %c0_i32_0 : i32, i32
  }
  func.func @transform_3(%arg0: i32) -> (i32, i32) {
    %c0_i32 = arith.constant 0 : i32
    %c0_i32_0 = arith.constant 0 : i32
    %c0_i32_1 = arith.constant 0 : i32
    return %c0_i32, %c0_i32_0 : i32, i32
  }
  func.func @transform_4(%arg0: i32) -> (i32, i32) {
    %c0_i32 = arith.constant 0 : i32
    %c0_i32_0 = arith.constant 0 : i32
    %c0_i32_1 = arith.constant 0 : i32
    return %c0_i32, %c0_i32_0 : i32, i32
  }
  func.func @transform_5(%arg0: i32) -> (i32, i32) {
    %c0_i32 = arith.constant 0 : i32
    %c0_i32_0 = arith.constant 0 : i32
    %c0_i32_1 = arith.constant 0 : i32
    return %c0_i32, %c0_i32_0 : i32, i32
  }
  func.func @transform_6(%arg0: i32) -> (i32, i32) {
    %c0_i32 = arith.constant 0 : i32
    %c0_i32_0 = arith.constant 0 : i32
    %c0_i32_1 = arith.constant 0 : i32
    return %c0_i32, %c0_i32_0 : i32, i32
  }
  func.func @transform_7(%arg0: i32) -> (i32, i32) {
    %c0_i32 = arith.constant 0 : i32
    %c0_i32_0 = arith.constant 0 : i32
    return %arg0, %c0_i32 : i32, i32
  }
}

</mosaic_0001>

<bundles_post_ra>
// kernel: tpu_custom_call.1
= control target key start
LH: loop header
LB: loop body
LE: loop exit
PB: predicated region body
PF: predicated region fallthrough
CT: control target
= control target key end

     0   :  { %v221_v2 = vmov 0   ;;  %s312_s0 = inlined_call_operand.vmem [shape: f32[8,32], index: 0, kind: input, shape index: {}]   ;;  %s313_s1 = inlined_call_operand.vmem [shape: s32[8,1], index: 1, kind: input, shape index: {}]   ;;  %s314_s2 = inlined_call_operand.vmem [shape: f32[32,20], index: 2, kind: input, shape index: {}]   ;;  %s315_s3 = inlined_call_operand.vmem [shape: f32[9,10], index: 3, kind: input, shape index: {}]   ;;  %s316_s4 = inlined_call_operand.vmem [shape: f32[20,10], index: 4, kind: input, shape index: {}]   ;;  %s317_s5 = inlined_call_operand.vmem [shape: f32[10,128], index: 5, kind: input, shape index: {}]   ;;  %s318_s6 = inlined_call_operand.vmem [shape: f32[2,128], index: 6, kind: input, shape index: {}]   ;;  %s319_s7 = inlined_call_operand.hbm [shape: f32[8,128], index: 7, kind: output, shape index: {}]  }
   0x1   :  { %v44_v0 = vld [vmem:[%s314_s2 + $0x18] sm:$0xff]  ;;  %v43_v1 = vld [vmem:[%s314_s2 + $0x10] sm:$0xff]  ;;  %192 = vset.pattern.permute.xlu0 %v221_v2  ;;  %v28_v3 = vld [vmem:[%s313_s1] sm:$0xff] }
   0x2   :  { %62 = vmatpush.msra.mxu0 %v44_v0  ;;  %v42_v4 = vld [vmem:[%s314_s2 + $0x8] sm:$0xff]  ;;  %32 = vperm.xlu0 %192, %v28_v3  }
   0x4   :  { %63 = vmatpush.msra.mxu0 %v43_v1 }
   0x5   :  { %12 = vsyncpa [#allocation3], 0  ;;  %v41_v5 = vld [vmem:[%s314_s2] sm:$0xff]  ;;  %vm46_vm0 = vcmask 261120   ;;  %v103_v7 = vld [vmem:[%s316_s4 + $0x10] sm:$0xf]  ;;  %v29_v12 = vlaneseq }
   0x6   :  { %64 = vmatpush.msra.mxu0 %v42_v4  ;;  %v27_v6 = vld [vmem:[%s312_s0] sm:$0xff]  ;;  %vm108_vm1 = vcmask 1043456   ;;  %v102_v8 = vld [vmem:[%s316_s4 + $0x8] sm:$0xff]  ;;  %vm77_vm2 = vcmask 1040384   ;;  %vm73_vm5 = vcmask 72704   ;;  %v222_v15 = vmov 0.0  }
   0x7   :  { %185 = vmatpush.msk.msra.mxu2 %vm108_vm1, %v103_v7  ;;  %v101_v9 = vld [vmem:[%s316_s4] sm:$0xff]  ;;  %v72_v10 = vld [vmem:[%s315_s3 + $0x8] sm:$0x1]  ;;  %v30_v13 = vand.u32 127, %v29_v12  ;;  %vm104_vm7 = vcmask 162816   ;;  %vm140_vm8 = vcmask 1041408  }
   0x8   :  { %65 = vmatpush.msra.mxu0 %v41_v5  ;;  %v71_v11 = vld [vmem:[%s315_s3] sm:$0xff]  ;;  %183 = vmatpush.msk.msra.mxu1 %vm77_vm2, %v72_v10  ;;  %v134_v21 = vld [vmem:[%s317_s5 + $0x8] sm:$0x3]  ;;  %vm136_vm9 = vcmask 80896   ;;  %s223_s26 = smov [#allocation2]   ;;  %s172_s30 = sshll.u32 %s319_s7, 4  ;;  %s173_s30 = int_to_ptr.hbm [resolvable:$true] %s172_s30 }
   0x9   :  { %182 = vmatmul.msk.f32.vlgmr.msra.gmra.mxu0 %vm46_vm0, %v27_v6  ;;  %126 = vmatpush.msra.mxu2 %v102_v8  ;;  %vm35_vm3 = vcmp.eq.s32.totalorder %v30_v13, 8  ;;  %v193_v17 = vld [vmem:[%s318_s6] ss:$0 sm:$0xff]  ;;  %v194_v27 = vld [vmem:[%s318_s6 + $0x1] ss:$0 sm:$0xff]  ;;  %s170_s27 = sshll.u32 %s223_s26, 4  ;;  %s171_s27 = int_to_ptr.vmem [resolvable:$true] %s170_s27 }
   0xa   :  { %96 = vmatpush.msra.mxu1 %v71_v11  ;;  %187 = vmatpush.msk.msra.mxu3 %vm140_vm8, %v134_v21  ;;  %v133_v22 = vld [vmem:[%s317_s5] sm:$0xff] }
   0xb   :  { %127 = vmatpush.msra.mxu2 %v101_v9 }
   0xc   :  { %159 = vmatpush.msra.mxu3 %v133_v22 }
  0x74   :  { %v33_v14 = vpop.permute.xlu0 %32 }
  0x75   :  { %vm34_vm4 = vcmp.eq.s32.totalorder %v30_v13, %v33_v14 }
  0x76   :  { %vm36_vm6 = vmor %vm34_vm4, %vm35_vm3 }
  0x77   :  { %v181_v16 = vsel %vm36_vm6, 1.0, %v222_v15 }
  0x78   :  { %184 = vmatmul.msk.f32.vlgmr.msra.gmra.mxu1 %vm73_vm5, %v181_v16 }
  0x86   :  { %v67_v18 = vpop.f32.mrf.mxu0 }
  0x87   :  { %v68_v19 = vadd.f32 %v193_v17, %v67_v18 }
  0x89   :  { %v70_v20 = vmax.f32 %v68_v19, 0.0 }
  0x8b   :  { %186 = vmatmul.msk.f32.vlgmr.msra.gmra.mxu2 %vm104_vm7, %v70_v20 }
  0xf5   :  { %v98_v23 = vpop.f32.mrf.mxu1 }
 0x10e   :  { %v129_v24 = vpop.f32.mrf.mxu2 }
 0x10f   :  { %v130_v25 = vadd.f32 %v129_v24, %v98_v23 }
 0x111   :  { %v132_v26 = vmax.f32 %v130_v25, 0.0 }
 0x113   :  { %188 = vmatmul.msk.f32.vlgmr.msra.gmra.mxu3 %vm136_vm9, %v132_v26 }
 0x196   :  { %v161_v28 = vpop.f32.mrf.mxu3 }
 0x197   :  { %v162_v29 = vadd.f32 %v194_v27, %v161_v28 }
 0x199   :  { %164 = vst [vmem:[#allocation2] sm:$0xff] %v162_v29 }
 0x19a   :  { %175 = dma.vmem_to_hbm [thread:$0]  %s171_s27, 128, %s173_s30, [#allocation3]  }
 0x19b   :  { %219 = dma.done.wait [#allocation3], 128  }
 0x19c   :  { %220 = vsyncadd [#allocation3], 4294967168 }
 0x19d   :  { %180 = vsyncpa [#allocation3], 1 }

</bundles_post_ra>
